<compile_context>
chip_gen: v5e
topology: v5e:2x2
jax: 0.10.0
libtpu: 0.0.40
codegen_flags: <defaults>
</compile_context>

<pallas_src>
import functools

import jax
import jax.numpy as jnp
from jax.experimental import pallas as pl
from jax.experimental.pallas import tpu as pltpu


def _mean_pool_kernel(h_ref, emb_ref, acc_ref, *, seq_len, seq_block):
    """Accumulate sum over the seq axis; finalize mean on the last seq tile."""
    ki = pl.program_id(1)

    @pl.when(ki == 0)
    def _init():
        acc_ref[...] = jnp.zeros_like(acc_ref)

    h = h_ref[...]                                      # (Bt, St, H), HBM dtype
    if seq_len % seq_block != 0:
        # Mask pad rows of the (possibly partial) last seq tile so garbage
        # rows never enter the mean.
        pos = ki * seq_block + jax.lax.broadcasted_iota(jnp.int32, h.shape, 1)
        h = jnp.where(pos < seq_len, h, jnp.zeros_like(h))

    # Per-tile upcast; accumulate in f32 (keeps bf16 inputs bf16 on the HBM side).
    acc_ref[...] += jnp.sum(h.astype(jnp.float32), axis=1)

    @pl.when(ki == pl.num_programs(1) - 1)
    def _finalize():
        emb_ref[...] = (acc_ref[...] * (1.0 / seq_len)).astype(emb_ref.dtype)


def _choose_tiles(B, S, H, itemsize, budget_bytes=4 * 1024 * 1024):
    """Keep one input buffer <= ~4 MiB so 2x double-buffering (+ scratch/output)
    fits the default scoped VMEM on every generation (16 MiB v5e, 32 MiB v6e/v7x,
    well inside v7x's 64 MiB physical VMEM)."""
    Bt = min(B, 8)
    max_rows = max(1, budget_bytes // max(1, Bt * H * itemsize))
    if max_rows >= S or S <= 8:
        St = S                                   # whole seq axis in one tile
    else:
        St = min(S, max(8, (max_rows // 8) * 8))  # multiple of 8 (sublane tile)
    return Bt, St


def mean_pool(hidden_states, *, seq_block_override=None):
    """Mean over axis=1 of a [B, S, H] tensor, tiled + pipelined on TPU."""
    B, S, H = hidden_states.shape
    itemsize = jnp.dtype(hidden_states.dtype).itemsize
    Bt, St = _choose_tiles(B, S, H, itemsize)
    if seq_block_override is not None:
        St = seq_block_override
    grid = (pl.cdiv(B, Bt), pl.cdiv(S, St))

    kernel = functools.partial(_mean_pool_kernel, seq_len=S, seq_block=St)

    cost = pl.CostEstimate(
        flops=B * S * H + B * H,
        transcendentals=0,
        bytes_accessed=B * S * H * itemsize + B * H * 4,
    )

    return pl.pallas_call(
        kernel,
        out_shape=jax.ShapeDtypeStruct((B, H), jnp.float32),
        grid_spec=pltpu.PrefetchScalarGridSpec(
            num_scalar_prefetch=0,
            grid=grid,
            in_specs=[pl.BlockSpec((Bt, St, H), lambda i, k: (i, k, 0))],
            out_specs=pl.BlockSpec((Bt, H), lambda i, k: (i, 0)),
            scratch_shapes=[pltpu.VMEM((Bt, H), jnp.float32)],
        ),
        compiler_params=pltpu.CompilerParams(
            dimension_semantics=("parallel", "arbitrary")),
        cost_estimate=cost,
    )(hidden_states)


def binary_classifier_forward(hidden_states, weight, bias):
    """hidden_states: [B, S, H]; weight: [C, H] (torch layout); bias: [C].

    Returns (logits, embeddings, all_hidden_states), mirroring the PyTorch module.
    """
    # embeddings = out[0].mean(dim=1)  -- Pallas kernel
    embeddings = mean_pool(hidden_states)

    # dropout: eval-mode identity (nn.Dropout is a no-op at inference).
    # logits = embeddings @ W^T + b  -- tiny (H x 2) projection, lane width 2:
    # done in plain XLA to avoid masked narrow-lane stores inside the kernel.
    logits = embeddings @ weight.T.astype(jnp.float32) + bias.astype(jnp.float32)

    all_hidden_states = (hidden_states,)
    return logits, embeddings, all_hidden_states


if __name__ == "__main__":
    key = jax.random.PRNGKey(0)
    k_h, k_w, k_b, k_h2 = jax.random.split(key, 4)

    # --- small test consistent with the module: B=2, S=8, H=32, C=2 ---
    B, S, H, C = 2, 8, 32, 2
    hidden_states = jax.random.normal(k_h, (B, S, H), dtype=jnp.float32)

    # nn.Linear(H, 2) init: U(-1/sqrt(H), 1/sqrt(H)) for weight and bias.
    bound = 1.0 / (H ** 0.5)
    weight = jax.random.uniform(k_w, (C, H), minval=-bound, maxval=bound,
                                dtype=jnp.float32)
    bias = jax.random.uniform(k_b, (C,), minval=-bound, maxval=bound,
                              dtype=jnp.float32)

    logits, embeddings, all_hidden_states = binary_classifier_forward(
        hidden_states, weight, bias)
    jax.block_until_ready((logits, embeddings))

    ref_emb = hidden_states.mean(axis=1)
    ref_logits = ref_emb @ weight.T + bias
    assert jnp.allclose(embeddings, ref_emb, atol=1e-5, rtol=1e-5)
    assert jnp.allclose(logits, ref_logits, atol=1e-5, rtol=1e-5)

    # --- second check: exercise the tiled seq-reduction + partial-tile masking ---
    B2, S2, H2 = 3, 24, 128
    h2 = jax.random.normal(k_h2, (B2, S2, H2), dtype=jnp.float32)
    emb2 = mean_pool(h2, seq_block_override=16)   # 2 seq tiles, last one partial
    jax.block_until_ready(emb2)
    assert jnp.allclose(emb2, h2.mean(axis=1), atol=1e-5, rtol=1e-5)

    print("KERNEL_OK")
</pallas_src>

<mosaic_0001>
module attributes {stable_mosaic.version = 11 : i64} {
  func.func @_mean_pool_kernel(%arg0: i32, %arg1: i32, %arg2: memref<2x8x32xf32, #tpu.memory_space<vmem>>, %arg3: memref<2x32xf32, #tpu.memory_space<vmem>>, %arg4: memref<2x32xf32, #tpu.memory_space<vmem>>) attributes {dimension_semantics = [#tpu.dimension_semantics<parallel>, #tpu.dimension_semantics<arbitrary>], iteration_bounds = array<i64: 1, 1>, scalar_prefetch = 0 : i64, scratch_operands = 1 : i64, tpu.core_type = #tpu.core_type<tc>, window_params = [{transform_indices = @transform_0, window_bounds = array<i64: 2, 8, 32>}, {transform_indices = @transform_1, window_bounds = array<i64: 2, 32>}]} {
    %c0_i32 = arith.constant 0 : i32
    %0 = arith.cmpi eq, %arg1, %c0_i32 : i32
    %1 = arith.extui %0 : i1 to i32
    %c0_i32_0 = arith.constant 0 : i32
    %2 = arith.cmpi ne, %1, %c0_i32_0 : i32
    scf.if %2 {
      %cst_9 = arith.constant 0.000000e+00 : f32
      %11 = vector.broadcast %cst_9 : f32 to vector<2x32xf32>
      %c0_10 = arith.constant 0 : index
      %c0_11 = arith.constant 0 : index
      %12 = vector.load %arg4[%c0_10, %c0_11] : memref<2x32xf32, #tpu.memory_space<vmem>>, vector<2x32xf32>
      tpu.vector_store %arg4[%c0_10, %c0_11], %11 {strides = array<i32>} : memref<2x32xf32, #tpu.memory_space<vmem>>, vector<2x32xf32>,
    } else {
    }
    %c0 = arith.constant 0 : index
    %c0_1 = arith.constant 0 : index
    %c0_2 = arith.constant 0 : index
    %3 = vector.load %arg2[%c0, %c0_1, %c0_2] : memref<2x8x32xf32, #tpu.memory_space<vmem>>, vector<2x8x32xf32>
    %c0_3 = arith.constant 0 : index
    %c0_4 = arith.constant 0 : index
    %4 = vector.load %arg4[%c0_3, %c0_4] : memref<2x32xf32, #tpu.memory_space<vmem>>, vector<2x32xf32>
    %cst = arith.constant dense<0.000000e+00> : vector<2x32xf32>
    %5 = vector.multi_reduction <add>, %3, %cst [1] : vector<2x8x32xf32> to vector<2x32xf32>
    %6 = arith.addf %4, %5 : vector<2x32xf32>
    %c0_5 = arith.constant 0 : index
    %c0_6 = arith.constant 0 : index
    %7 = vector.load %arg4[%c0_5, %c0_6] : memref<2x32xf32, #tpu.memory_space<vmem>>, vector<2x32xf32>
    tpu.vector_store %arg4[%c0_5, %c0_6], %6 {strides = array<i32>} : memref<2x32xf32, #tpu.memory_space<vmem>>, vector<2x32xf32>,
    %c0_i32_7 = arith.constant 0 : i32
    %8 = arith.cmpi eq, %arg1, %c0_i32_7 : i32
    %9 = arith.extui %8 : i1 to i32
    %c0_i32_8 = arith.constant 0 : i32
    %10 = arith.cmpi ne, %9, %c0_i32_8 : i32
    scf.if %10 {
      %c0_9 = arith.constant 0 : index
      %c0_10 = arith.constant 0 : index
      %11 = vector.load %arg4[%c0_9, %c0_10] : memref<2x32xf32, #tpu.memory_space<vmem>>, vector<2x32xf32>
      %cst_11 = arith.constant 1.250000e-01 : f32
      %12 = vector.broadcast %cst_11 : f32 to vector<2x32xf32>
      %13 = arith.mulf %11, %12 : vector<2x32xf32>
      %c0_12 = arith.constant 0 : index
      %c0_13 = arith.constant 0 : index
      %14 = vector.load %arg3[%c0_12, %c0_13] : memref<2x32xf32, #tpu.memory_space<vmem>>, vector<2x32xf32>
      tpu.vector_store %arg3[%c0_12, %c0_13], %13 {strides = array<i32>} : memref<2x32xf32, #tpu.memory_space<vmem>>, vector<2x32xf32>,
    } else {
    }
    return
  }
  func.func @transform_0(%arg0: i32, %arg1: i32) -> (i32, i32, i32) {
    %c0_i32 = arith.constant 0 : i32
    %c0_i32_0 = arith.constant 0 : i32
    return %arg0, %arg1, %c0_i32 : i32, i32, i32
  }
  func.func @transform_1(%arg0: i32, %arg1: i32) -> (i32, i32) {
    %c0_i32 = arith.constant 0 : i32
    %c0_i32_0 = arith.constant 0 : i32
    return %arg0, %c0_i32 : i32, i32
  }
}

</mosaic_0001>

<bundles_post_ra>
// kernel: tpu_custom_call.1
= control target key start
LH: loop header
LB: loop body
LE: loop exit
PB: predicated region body
PF: predicated region fallthrough
CT: control target
= control target key end

     0   :  { %6 = vsyncpa [#allocation4], 0  ;;  %s161_s0 = inlined_call_operand.hbm [shape: f32[2,8,32], index: 0, kind: input, shape index: {}]   ;;  %s162_s1 = inlined_call_operand.hbm [shape: f32[2,32], index: 1, kind: output, shape index: {}]  }
   0x1   :  { %7 = vsyncpa [#allocation5], 0  ;;  %s12_s8 = sshll.u32 %s161_s0, 4  ;;  %s137_s9 = smov [#allocation3]   ;;  %s13_s8 = int_to_ptr.hbm [resolvable:$true] %s12_s8 }
   0x2   :  { %s14_s10 = sshll.u32 %s137_s9, 4  ;;  %s138_s11 = smov 128   ;;  %s15_s10 = int_to_ptr.vmem [resolvable:$true] %s14_s10 }
   0x3   :  { %s139_s12 = smov 8  }
   0x4   :  { %20 = dma.hbm_to_vmem [thread:$0]  %s13_s8, 256, %s15_s10, [#allocation4], %s138_s11, %s138_s11, %s139_s12  }
   0x5   :  { %133 = dma.done.wait [#allocation4], 256  }
   0x6   :  { %134 = vsyncadd [#allocation4], 4294967040  ;;  %vm29_vm0 = vcmask 254976   ;;  %v140_v0 = vmov 0.0   ;;  %vm34_vm1 = vcmask 261120   ;;  %v31_v1 = vld [vmem:[#allocation3] sm:$0xff] }
   0x7   :  { %30 = vst.msk [vmem:[#allocation2] sm:$0x3] %vm29_vm0, %v140_v0  ;;  %v32_v2 = vld [vmem:[#allocation3 + $0x8] sm:$0xff]  ;;  %v35_v3 = vsel %vm34_vm1, %v31_v1, 0.0  ;;  %vm51_vm2 = vcmask 1041409   ;;  %s141_s0 = smov [#allocation6]  }
   0x8   :  { %v42_v4 = vsel %vm34_vm1, %v32_v2, 0.0  ;;  %v36_v5 = vrot.slane %v35_v3, 4  ;;  %s68_s13 = sshll.u32 %s141_s0, 4  ;;  %s70_s16 = sshll.u32 %s162_s1, 4  ;;  %s69_s13 = int_to_ptr.vmem [resolvable:$true] %s68_s13  ;;  %s71_s16 = int_to_ptr.hbm [resolvable:$true] %s70_s16 }
   0x9   :  { %v43_v6 = vrot.slane %v42_v4, 4 }
   0xa   :  { %v37_v7 = vadd.f32 %v36_v5, %v35_v3 }
   0xb   :  { %v44_v8 = vadd.f32 %v43_v6, %v42_v4 }
   0xc   :  { %v38_v9 = vrot.slane %v37_v7, 2 }
   0xd   :  { %v45_v10 = vrot.slane %v44_v8, 2 }
   0xe   :  { %v39_v11 = vadd.f32 %v38_v9, %v37_v7  ;;  %v33_v15 = vld [vmem:[#allocation2] sm:$0x3] }
   0xf   :  { %v46_v12 = vadd.f32 %v45_v10, %v44_v8 }
  0x10   :  { %v40_v13 = vrot.slane %v39_v11, 1 }
  0x11   :  { %v47_v14 = vrot.slane %v46_v12, 1 }
  0x12   :  { %v41_v16 = vadd.f32 %v40_v13, %v39_v11 }
  0x13   :  { %v48_v17 = vadd.f32 %v47_v14, %v46_v12 }
  0x15   :  { %v52_v18 = vsel %vm51_vm2, %v48_v17, %v41_v16 }
  0x16   :  { %v54_v19 = vadd.f32 %v52_v18, %v33_v15 }
  0x18   :  { %56 = vst.msk [vmem:[#allocation2] sm:$0x3] %vm29_vm0, %v54_v19 }
  0x1f   :  { %v60_v20 = vld [vmem:[#allocation2] sm:$0x3] }
  0x20   :  { %v61_v21 = vmul.f32 0.125, %v60_v20 }
  0x22   :  { %62 = vst.msk [vmem:[#allocation6] sm:$0x3] %vm29_vm0, %v61_v21 }
  0x23   :  { %73 = dma.vmem_to_hbm [thread:$0]  %s69_s13, 32, %s71_s16, [#allocation5]  }
  0x24   :  { %135 = dma.done.wait [#allocation5], 32  }
  0x25   :  { %136 = vsyncadd [#allocation5], 4294967264 }
  0x26   :  { %78 = vsyncpa [#allocation4], 1 }
  0x27   :  { %79 = vsyncpa [#allocation5], 1 }

</bundles_post_ra>
